<compile_context>
chip_gen: v7x
topology: tpu7x:2x2x1
jax: 0.10.0
libtpu: 0.0.40
codegen_flags: <defaults>
</compile_context>

<pallas_src>
import jax
import jax.numpy as jnp
from jax.experimental import pallas as pl
from jax.experimental.pallas import tpu as pltpu


def upsample_conv_kernel(x_ref, w_ref, b_ref, o_ref):
    # x_ref: (R, W, Cin)        R image rows of NHWC pixels
    # w_ref: (Cin, Cout)        1x1 conv weight with the BN scale already folded in
    # b_ref: (1, Cout) f32      folded BN bias = beta - mean * gamma / sqrt(var + eps)
    # o_ref: (R, 2, W, 2*Cout)  nearest-2x: H-copy on dim 1, W-copy packed on the lanes
    rows, w, cin = x_ref.shape
    cout = w_ref.shape[1]

    x = x_ref[...].reshape(rows * w, cin)
    y = jnp.dot(x, w_ref[...], preferred_element_type=jnp.float32)   # MXU, f32 accum
    y = y + b_ref[...]                       # folded BN bias (kept in f32)
    y = jnp.where(y > 0, y, 0.1 * y)         # LeakyReLU(0.1)
    y = y.astype(o_ref.dtype).reshape(rows, w, cout)

    yy = jnp.concatenate([y, y], axis=-1)    # W-duplication, lane-packed: (R, W, 2*Cout)
    o_ref[:, 0, :, :] = yy                   # H-duplication: two row copies
    o_ref[:, 1, :, :] = yy


def _rows_per_step(total_rows, w, target_pixels):
    """Largest divisor of total_rows giving ~target_pixels pixels per grid step."""
    r = max(1, min(total_rows, target_pixels // max(w, 1)))
    while total_rows % r:
        r -= 1
    # Prefer >= 2 grid steps when possible so the parallel axis can shard across
    # both TensorCores on v7x.
    if total_rows // r < 2 and r % 2 == 0:
        r //= 2
    return r


def upsample_forward(x_nchw, conv_w, gamma, beta, run_mean, run_var,
                     eps=1e-5, target_pixels=2048):
    """Forward of Upsample(in_ch, out_ch). x_nchw: (N, Cin, H, W) -> (N, Cout, 2H, 2W)."""
    N, Cin, H, W = x_nchw.shape
    Cout = conv_w.shape[0]
    NH = N * H

    rows_per_step = _rows_per_step(NH, W, target_pixels)
    grid_len = NH // rows_per_step

    # Fold eval-mode BN into the conv:  y = (x @ W^T) * scale + bias
    inv_std = jax.lax.rsqrt(run_var.astype(jnp.float32) + eps)
    scale = gamma.astype(jnp.float32) * inv_std                       # (Cout,)
    bias = (beta.astype(jnp.float32)
            - run_mean.astype(jnp.float32) * scale).reshape(1, Cout)  # stays f32
    w2d = conv_w.reshape(Cout, Cin).astype(jnp.float32).T * scale[None, :]
    w2d = w2d.astype(x_nchw.dtype)                                    # (Cin, Cout)

    # NCHW -> (N*H, W, Cin).  With allow_input_fusion XLA may fold this transpose
    # into the kernel's input DMAs instead of materializing it in HBM.
    x_rows = jnp.transpose(x_nchw, (0, 2, 3, 1)).reshape(NH, W, Cin)

    out_dtype = x_nchw.dtype
    itemsize = jnp.dtype(out_dtype).itemsize
    in_tile_bytes = rows_per_step * W * Cin * itemsize
    out_tile_bytes = rows_per_step * 2 * W * 2 * Cout * itemsize
    # double-buffered in + out, resident weights/bias, plus headroom; cap for v7x.
    vmem_limit = int(min(64 * 2**20, max(32 * 2**20, 4 * (in_tile_bytes + out_tile_bytes))))

    out = pl.pallas_call(
        upsample_conv_kernel,
        out_shape=jax.ShapeDtypeStruct((NH, 2, W, 2 * Cout), out_dtype),
        grid=(grid_len,),
        in_specs=[
            pl.BlockSpec((rows_per_step, W, Cin), lambda r: (r, 0, 0)),
            pl.BlockSpec((Cin, Cout), lambda r: (0, 0)),
            pl.BlockSpec((1, Cout), lambda r: (0, 0)),
        ],
        out_specs=pl.BlockSpec((rows_per_step, 2, W, 2 * Cout), lambda r: (r, 0, 0, 0)),
        compiler_params=pltpu.CompilerParams(
            dimension_semantics=("parallel",),
            vmem_limit_bytes=vmem_limit,
            allow_input_fusion=[True, False, False],
        ),
    )(x_rows, w2d, bias)

    # Pure contiguous (free) reshapes: (NH,2,W,2C) -> (N,H,2,W,2,C) -> (N,2H,2W,C).
    out_nhwc = out.reshape(N, H, 2, W, 2, Cout).reshape(N, 2 * H, 2 * W, Cout)
    # Only remaining layout pass: back to NCHW to match the PyTorch interface.
    # (A fully-fused pipeline would keep NHWC and skip this.)
    return jnp.transpose(out_nhwc, (0, 3, 1, 2))


def reference_forward(x, conv_w, gamma, beta, run_mean, run_var, eps=1e-5):
    """Pure-JAX reference matching the PyTorch forward (eval-mode BN)."""
    y = jax.lax.conv_general_dilated(
        x, conv_w, window_strides=(1, 1), padding="VALID",
        dimension_numbers=("NCHW", "OIHW", "NCHW"))
    m = run_mean[None, :, None, None]
    v = run_var[None, :, None, None]
    g = gamma[None, :, None, None]
    b = beta[None, :, None, None]
    y = (y - m) / jnp.sqrt(v + eps) * g + b
    y = jnp.where(y > 0, y, 0.1 * y)
    y = jnp.repeat(jnp.repeat(y, 2, axis=2), 2, axis=3)  # nearest 2x
    return y


if __name__ == "__main__":
    key = jax.random.PRNGKey(0)
    k_x, k_w, k_g, k_b, k_m, k_v = jax.random.split(key, 6)

    N, Cin, H, W = 2, 4, 16, 16
    Cout = 8

    x = jax.random.normal(k_x, (N, Cin, H, W), dtype=jnp.float32)
    conv_w = jax.random.normal(k_w, (Cout, Cin, 1, 1), dtype=jnp.float32) * 0.1
    gamma = jax.random.uniform(k_g, (Cout,), dtype=jnp.float32, minval=0.5, maxval=1.5)
    beta = jax.random.normal(k_b, (Cout,), dtype=jnp.float32) * 0.1
    run_mean = jax.random.normal(k_m, (Cout,), dtype=jnp.float32) * 0.1
    run_var = jax.random.uniform(k_v, (Cout,), dtype=jnp.float32, minval=0.5, maxval=1.5)

    fwd = jax.jit(upsample_forward)
    out = jax.block_until_ready(fwd(x, conv_w, gamma, beta, run_mean, run_var))

    ref = reference_forward(x, conv_w, gamma, beta, run_mean, run_var)
    assert out.shape == (N, Cout, 2 * H, 2 * W), out.shape
    assert jnp.allclose(out, ref, rtol=1e-5, atol=1e-5), float(jnp.max(jnp.abs(out - ref)))

    print("KERNEL_OK")
</pallas_src>

<mosaic_0001>
module attributes {stable_mosaic.version = 11 : i64} {
  func.func @upsample_conv_kernel(%arg0: i32, %arg1: memref<16x16x4xf32, #tpu.memory_space<vmem>>, %arg2: memref<4x8xf32, #tpu.memory_space<vmem>>, %arg3: memref<1x8xf32, #tpu.memory_space<vmem>>, %arg4: memref<16x2x16x16xf32, #tpu.memory_space<vmem>>) attributes {dimension_semantics = [#tpu.dimension_semantics<parallel>], iteration_bounds = array<i64: 2>, scalar_prefetch = 0 : i64, scratch_operands = 0 : i64, tpu.core_type = #tpu.core_type<tc>, window_params = [{transform_indices = @transform_0, window_bounds = array<i64: 16, 16, 4>}, {pipeline_mode = #tpu.pipeline_mode<synchronous>, transform_indices = @transform_1, window_bounds = array<i64: 4, 8>}, {pipeline_mode = #tpu.pipeline_mode<synchronous>, transform_indices = @transform_2, window_bounds = array<i64: 1, 8>}, {transform_indices = @transform_3, window_bounds = array<i64: 16, 2, 16, 16>}]} {
    %c0 = arith.constant 0 : index
    %c0_0 = arith.constant 0 : index
    %c0_1 = arith.constant 0 : index
    %0 = vector.load %arg1[%c0, %c0_0, %c0_1] : memref<16x16x4xf32, #tpu.memory_space<vmem>>, vector<16x16x4xf32>
    %1 = vector.shape_cast %0 : vector<16x16x4xf32> to vector<256x4xf32>
    %c0_2 = arith.constant 0 : index
    %c0_3 = arith.constant 0 : index
    %2 = vector.load %arg2[%c0_2, %c0_3] : memref<4x8xf32, #tpu.memory_space<vmem>>, vector<4x8xf32>
    %cst = arith.constant dense<0.000000e+00> : vector<256x8xf32>
    %3 = tpu.matmul %1, %2, %cst {dimension_numbers = #tpu.dot_dimension_numbers<[1], [0], [0], [1], [0, 0, 1, 1], [], []>} : vector<256x4xf32>, vector<4x8xf32>, vector<256x8xf32> -> vector<256x8xf32>
    %c0_4 = arith.constant 0 : index
    %c0_5 = arith.constant 0 : index
    %4 = vector.load %arg3[%c0_4, %c0_5] : memref<1x8xf32, #tpu.memory_space<vmem>>, vector<1x8xf32>
    %5 = vector.broadcast %4 : vector<1x8xf32> to vector<256x8xf32>
    %6 = arith.addf %3, %5 : vector<256x8xf32>
    %cst_6 = arith.constant 0.000000e+00 : f32
    %7 = vector.broadcast %cst_6 : f32 to vector<256x8xf32>
    %8 = arith.cmpf ogt, %6, %7 : vector<256x8xf32>
    %cst_7 = arith.constant 1.000000e-01 : f32
    %9 = vector.broadcast %cst_7 : f32 to vector<256x8xf32>
    %10 = arith.mulf %9, %6 : vector<256x8xf32>
    %11 = arith.select %8, %6, %10 : vector<256x8xi1>, vector<256x8xf32>
    %12 = vector.shape_cast %11 : vector<256x8xf32> to vector<16x16x8xf32>
    %13 = tpu.concatenate %12, %12 in 2 : vector<16x16x8xf32>, vector<16x16x8xf32> -> vector<16x16x16xf32>
    %c0_8 = arith.constant 0 : index
    %c0_9 = arith.constant 0 : index
    %c0_10 = arith.constant 0 : index
    %c0_11 = arith.constant 0 : index
    %14 = vector.load %arg4[%c0_8, %c0_9, %c0_10, %c0_11] : memref<16x2x16x16xf32, #tpu.memory_space<vmem>>, vector<16x1x16x16xf32>
    %15 = vector.shape_cast %14 : vector<16x1x16x16xf32> to vector<16x16x16xf32>
    %16 = vector.shape_cast %13 : vector<16x16x16xf32> to vector<16x1x16x16xf32>
    tpu.vector_store %arg4[%c0_8, %c0_9, %c0_10, %c0_11], %16 {strides = array<i32>} : memref<16x2x16x16xf32, #tpu.memory_space<vmem>>, vector<16x1x16x16xf32>,
    %c0_12 = arith.constant 0 : index
    %c1 = arith.constant 1 : index
    %c0_13 = arith.constant 0 : index
    %c0_14 = arith.constant 0 : index
    %17 = vector.load %arg4[%c0_12, %c1, %c0_13, %c0_14] : memref<16x2x16x16xf32, #tpu.memory_space<vmem>>, vector<16x1x16x16xf32>
    %18 = vector.shape_cast %17 : vector<16x1x16x16xf32> to vector<16x16x16xf32>
    %19 = vector.shape_cast %13 : vector<16x16x16xf32> to vector<16x1x16x16xf32>
    tpu.vector_store %arg4[%c0_12, %c1, %c0_13, %c0_14], %19 {strides = array<i32>} : memref<16x2x16x16xf32, #tpu.memory_space<vmem>>, vector<16x1x16x16xf32>,
    return
  }
  func.func @transform_0(%arg0: i32) -> (i32, i32, i32) {
    %c0_i32 = arith.constant 0 : i32
    %c0_i32_0 = arith.constant 0 : i32
    %c0_i32_1 = arith.constant 0 : i32
    return %arg0, %c0_i32, %c0_i32_0 : i32, i32, i32
  }
  func.func @transform_1(%arg0: i32) -> (i32, i32) {
    %c0_i32 = arith.constant 0 : i32
    %c0_i32_0 = arith.constant 0 : i32
    %c0_i32_1 = arith.constant 0 : i32
    return %c0_i32, %c0_i32_0 : i32, i32
  }
  func.func @transform_2(%arg0: i32) -> (i32, i32) {
    %c0_i32 = arith.constant 0 : i32
    %c0_i32_0 = arith.constant 0 : i32
    %c0_i32_1 = arith.constant 0 : i32
    return %c0_i32, %c0_i32_0 : i32, i32
  }
  func.func @transform_3(%arg0: i32) -> (i32, i32, i32, i32) {
    %c0_i32 = arith.constant 0 : i32
    %c0_i32_0 = arith.constant 0 : i32
    %c0_i32_1 = arith.constant 0 : i32
    %c0_i32_2 = arith.constant 0 : i32
    return %arg0, %c0_i32, %c0_i32_0, %c0_i32_1 : i32, i32, i32, i32
  }
}

</mosaic_0001>

<bundles_post_ra>
// kernel: upsample_forward.1
= control target key start
LH: loop header
LB: loop body
LE: loop exit
PB: predicated region body
PF: predicated region fallthrough
CT: control target
= control target key end

     0   :  { %s1130_s12 = smov 0   ;;  %s1588_s0 = inlined_call_operand.vmem [shape: f32[32,16,4], index: 0, kind: input, shape index: {}]   ;;  %s1589_s1 = inlined_call_operand.vmem [shape: f32[4,8], index: 1, kind: input, shape index: {}]   ;;  %s1590_s2 = inlined_call_operand.vmem [shape: f32[1,8], index: 2, kind: input, shape index: {}]   ;;  %s1591_s3 = inlined_call_operand.vmem [shape: f32[32,2,16,16], index: 3, kind: output, shape index: {}]  }
   0x1 LB: > { %s926_s13 = sadd.s32 4294967295, %s1107_s12   ;;  %p930_p0 = scmp.ge.s32.totalorder %s1107_s12, 1  ;;  %s1107_s12 = sphi %s1130_s12, %s13_s12  }
   0x2   : > { %p139_p1 = scmp.lt.s32.totalorder %s1107_s12, 3 }
   0x4   : > { %p140_p2 = pnand %p930_p0, %p139_p1 }
   0x5   : > { %v211_v0 = vld [vmem:[%s1589_s1] sm:$0xf] (!%p140_p2)  ;;  %vm316_vm0 = vcmask (!%p140_p2), 1043456   ;;  %s931_s16 = sshll.u32 (!%p140_p2), %s926_s13, 4  ;;  %vm219_vm1 = vcmask (!%p140_p2), 31744   ;;  %s1109_s23 = smov (!%p140_p2), 8  }
   0x6   : > { %143 = sbr.rel (%p140_p2) target bundleno = 413 (0x19d), region = 32  ;;  %1040 = vmatprep.subr.msk.mxu0 (!%p140_p2), %vm316_vm0, %v211_v0  ;;  %1090 = vmatprep.subr.msk.mxu1 (!%p140_p2), %vm316_vm0, %v211_v0  ;;  %p166_p3 = scmp.lt.s32.totalorder (!%p140_p2), %s931_s16, 31  ;;  %v1216_v33 = vld [vmem:[%s1590_s2] ss:$0 sm:$0xff] (!%p140_p2) }
   0x7   : > { %1041 = vmatpush3.msk.msra.mxu0 (!%p140_p2), %vm316_vm0, %v211_v0  ;;  %1091 = vmatpush3.msk.msra.mxu1 (!%p140_p2), %vm316_vm0, %v211_v0 }
   0xd   : > { %s1593_s16 = smov (!%p166_p3, %s931_s16), 31 }
   0xe   : > { %s1005_s17 = sshll.u32 %s1593_s16, 4  ;;  %s1006_s24 = sshll.u32 %s1593_s16, 5 }
   0xf   : > { %s1147_s20 = scalar_lea.vmem %s1588_s0, %s1005_s17  ;;  %s1391_s27 = scalar_lea.vmem %s1591_s3, %s1006_s24 }
  0x10   : > { %v179_v1 = vld [vmem:[%s1147_s20] sm:$0xff]  ;;  %v180_v3 = vld [vmem:[%s1147_s20 + $0x8] sm:$0xff]  ;;  %v181_v5 = vld [vmem:[%s1147_s20 + $0x10] sm:$0xff] }
  0x11   : > { %v195_v2 = vld [vmem:[%s1147_s20 + $0x80] sm:$0xff]  ;;  %1042 = vmatprep.mubr.msk.f32.mxu0 %vm219_vm1, %v179_v1  ;;  %v196_v4 = vld [vmem:[%s1147_s20 + $0x88] sm:$0xff]  ;;  %v197_v6 = vld [vmem:[%s1147_s20 + $0x90] sm:$0xff] }
  0x12   : > { %1066 = vmatprep.mubr.msk.f32.mxu1 %vm219_vm1, %v195_v2  ;;  %1043 = vmatmul.mubr.msk.f32.vlgmr.msra.gmra.mrb[0].mxu0 %vm219_vm1, %v180_v3  ;;  %v182_v7 = vld [vmem:[%s1147_s20 + $0x18] sm:$0xff]  ;;  %v183_v9 = vld [vmem:[%s1147_s20 + $0x20] sm:$0xff]  ;;  %v184_v11 = vld [vmem:[%s1147_s20 + $0x28] sm:$0xff] }
  0x13   : > { %1067 = vmatmul.mubr.msk.f32.vlgmr.msra.gmra.mrb[0].mxu1 %vm219_vm1, %v196_v4  ;;  %1045 = vmatprep.mubr.msk.f32.mxu0 %vm219_vm1, %v181_v5  ;;  %v198_v8 = vld [vmem:[%s1147_s20 + $0x98] sm:$0xff]  ;;  %v199_v10 = vld [vmem:[%s1147_s20 + $0xa0] sm:$0xff]  ;;  %v200_v12 = vld [vmem:[%s1147_s20 + $0xa8] sm:$0xff] }
  0x14   : > { %1069 = vmatprep.mubr.msk.f32.mxu1 %vm219_vm1, %v197_v6  ;;  %v185_v13 = vld [vmem:[%s1147_s20 + $0x30] sm:$0xff]  ;;  %v186_v15 = vld [vmem:[%s1147_s20 + $0x38] sm:$0xff]  ;;  %v187_v17 = vld [vmem:[%s1147_s20 + $0x40] sm:$0xff] }
  0x15   : > { %v201_v14 = vld [vmem:[%s1147_s20 + $0xb0] sm:$0xff]  ;;  %v202_v16 = vld [vmem:[%s1147_s20 + $0xb8] sm:$0xff]  ;;  %v203_v18 = vld [vmem:[%s1147_s20 + $0xc0] sm:$0xff] }
  0x16   : > { %1046 = vmatmul.mubr.msk.f32.gmra.mrb[2].mxu0 %vm219_vm1, %v182_v7  ;;  %v188_v19 = vld [vmem:[%s1147_s20 + $0x48] sm:$0xff]  ;;  %v189_v21 = vld [vmem:[%s1147_s20 + $0x50] sm:$0xff]  ;;  %v190_v23 = vld [vmem:[%s1147_s20 + $0x58] sm:$0xff] }
  0x17   : > { %1070 = vmatmul.mubr.msk.f32.gmra.mrb[2].mxu1 %vm219_vm1, %v198_v8  ;;  %1048 = vmatprep.mubr.msk.f32.mxu0 %vm219_vm1, %v183_v9  ;;  %v204_v20 = vld [vmem:[%s1147_s20 + $0xc8] sm:$0xff]  ;;  %v205_v22 = vld [vmem:[%s1147_s20 + $0xd0] sm:$0xff]  ;;  %v206_v24 = vld [vmem:[%s1147_s20 + $0xd8] sm:$0xff] }
  0x18   : > { %1072 = vmatprep.mubr.msk.f32.mxu1 %vm219_vm1, %v199_v10  ;;  %v191_v25 = vld [vmem:[%s1147_s20 + $0x60] sm:$0xff]  ;;  %v192_v27 = vld [vmem:[%s1147_s20 + $0x68] sm:$0xff]  ;;  %v193_v29 = vld [vmem:[%s1147_s20 + $0x70] sm:$0xff] }
  0x19   : > { %v207_v26 = vld [vmem:[%s1147_s20 + $0xe0] sm:$0xff]  ;;  %v208_v28 = vld [vmem:[%s1147_s20 + $0xe8] sm:$0xff]  ;;  %v209_v30 = vld [vmem:[%s1147_s20 + $0xf0] sm:$0xff] }
  0x1a   : > { %1049 = vmatmul.mubr.msk.f32.gmra.mrb[4].mxu0 %vm219_vm1, %v184_v11  ;;  %v194_v31 = vld [vmem:[%s1147_s20 + $0x78] sm:$0xff] }
  0x1b   : > { %1073 = vmatmul.mubr.msk.f32.gmra.mrb[4].mxu1 %vm219_vm1, %v200_v12  ;;  %1051 = vmatprep.mubr.msk.f32.mxu0 %vm219_vm1, %v185_v13  ;;  %v210_v32 = vld [vmem:[%s1147_s20 + $0xf8] sm:$0xff] }
  0x1c   : > { %1075 = vmatprep.mubr.msk.f32.mxu1 %vm219_vm1, %v201_v14 }
  0x1e   : > { %1052 = vmatmul.mubr.msk.f32.gmra.mrb[6].mxu0 %vm219_vm1, %v186_v15 }
  0x1f   : > { %1076 = vmatmul.mubr.msk.f32.gmra.mrb[6].mxu1 %vm219_vm1, %v202_v16  ;;  %1054 = vmatprep.mubr.msk.f32.mxu0 %vm219_vm1, %v187_v17 }
  0x20   : > { %1078 = vmatprep.mubr.msk.f32.mxu1 %vm219_vm1, %v203_v18 }
  0x22   : > { %1055 = vmatmul.mubr.msk.f32.gmra.mrb[8].mxu0 %vm219_vm1, %v188_v19 }
  0x23   : > { %1079 = vmatmul.mubr.msk.f32.gmra.mrb[8].mxu1 %vm219_vm1, %v204_v20  ;;  %1057 = vmatprep.mubr.msk.f32.mxu0 %vm219_vm1, %v189_v21 }
  0x24   : > { %1081 = vmatprep.mubr.msk.f32.mxu1 %vm219_vm1, %v205_v22 }
  0x26   : > { %1058 = vmatmul.mubr.msk.f32.gmra.mrb[10].mxu0 %vm219_vm1, %v190_v23 }
  0x27   : > { %1082 = vmatmul.mubr.msk.f32.gmra.mrb[10].mxu1 %vm219_vm1, %v206_v24  ;;  %1060 = vmatprep.mubr.msk.f32.mxu0 %vm219_vm1, %v191_v25 }
  0x28   : > { %1084 = vmatprep.mubr.msk.f32.mxu1 %vm219_vm1, %v207_v26 }
  0x2a   : > { %1061 = vmatmul.mubr.msk.f32.gmra.mrb[12].mxu0 %vm219_vm1, %v192_v27 }
  0x2b   : > { %1085 = vmatmul.mubr.msk.f32.gmra.mrb[12].mxu1 %vm219_vm1, %v208_v28  ;;  %1063 = vmatprep.mubr.msk.f32.mxu0 %vm219_vm1, %v193_v29 }
  0x2c   : > { %1087 = vmatprep.mubr.msk.f32.mxu1 %vm219_vm1, %v209_v30 }
  0x2e   : > { %1064 = vmatmul.mubr.msk.f32.gmra.mrb[14].mxu0 %vm219_vm1, %v194_v31 }
  0x2f   : > { %1088 = vmatmul.mubr.msk.f32.gmra.mrb[14].mxu1 %vm219_vm1, %v210_v32 }
  0xe5   : > { %v1044_v34 = vpop.f32.mrb[0].mxu0 }
  0xe6   : > { %v1068_v35 = vpop.f32.mrb[0].mxu1  ;;  %v392_v36 = vadd.f32 %v1044_v34, %v1216_v33  ;;  %v386_v38 = vpop.f32.mrb[1].mxu0 }
  0xe7   : > { %v472_v37 = vadd.f32 %v1068_v35, %v1216_v33  ;;  %v466_v39 = vpop.f32.mrb[1].mxu1  ;;  %v387_v40 = vadd.f32 %v1216_v33, %v386_v38 }
  0xe8   : > { %vm546_vm3 = vcmp.gt.f32.partialorder %v392_v36, 0.0  ;;  %v578_v42 = vmul.f32 0.1, %v392_v36  ;;  %v467_v44 = vadd.f32 %v1216_v33, %v466_v39 }
  0xe9   : > { %vm562_vm2 = vcmp.gt.f32.partialorder %v472_v37, 0.0  ;;  %v594_v41 = vmul.f32 0.1, %v472_v37  ;;  %v577_v43 = vmul.f32 0.1, %v387_v40  ;;  %v1047_v45 = vpop.f32.mrb[2].mxu0 }
  0xea   : > { %v1071_v46 = vpop.f32.mrb[2].mxu1  ;;  %v402_v47 = vadd.f32 %v1047_v45, %v1216_v33  ;;  %v396_v48 = vpop.f32.mrb[3].mxu0  ;;  %v1226_v52 = vsel %vm546_vm3, %v392_v36, %v578_v42  ;;  %vm545_vm4 = vcmp.gt.f32.partialorder %v387_v40, 0.0  ;;  %v593_v54 = vmul.f32 0.1, %v467_v44 }
  0xeb   : > { %v482_v49 = vadd.f32 %v1071_v46, %v1216_v33  ;;  %v1224_v50 = vsel %vm562_vm2, %v472_v37, %v594_v41  ;;  %v476_v51 = vpop.f32.mrb[3].mxu1  ;;  %675 = vrot.lane.b32.xlu0 %v1226_v52, %s1109_s23  ;;  %v397_v55 = vadd.f32 %v1216_v33, %v396_v48  ;;  %v1236_v60 = vsel %vm545_vm4, %v387_v40, %v577_v43 }
  0xec   : > { %707 = vrot.lane.b32.xlu1 %v1224_v50, %s1109_s23  ;;  %v580_v53 = vmul.f32 0.1, %v402_v47  ;;  %vm548_vm5 = vcmp.gt.f32.partialorder %v402_v47, 0.0  ;;  %v477_v56 = vadd.f32 %v1216_v33, %v476_v51  ;;  %vm561_vm6 = vcmp.gt.f32.partialorder %v467_v44, 0.0 }
  0xed   : > { %v1050_v57 = vpop.f32.mrb[4].mxu0  ;;  %v596_v58 = vmul.f32 0.1, %v482_v49  ;;  %vm564_vm7 = vcmp.gt.f32.partialorder %v482_v49, 0.0  ;;  %v579_v0 = vmul.f32 0.1, %v397_v55  ;;  %v1242_v2 = vsel %vm561_vm6, %v467_v44, %v593_v54 }
  0xee   : > { %v1234_v59 = vsel %vm548_vm5, %v402_v47, %v580_v53  ;;  %v406_v61 = vpop.f32.mrb[5].mxu0  ;;  %v1074_v62 = vpop.f32.mrb[4].mxu1  ;;  %v595_v1 = vmul.f32 0.1, %v477_v56  ;;  %v412_v4 = vadd.f32 %v1050_v57, %v1216_v33  ;;  %vm547_vm8 = vcmp.gt.f32.partialorder %v397_v55, 0.0 }
  0xef   : > { %673 = vrot.lane.b32.xlu0 %v1236_v60, %s1109_s23  ;;  %v486_v63 = vpop.f32.mrb[5].mxu1  ;;  %v407_v5 = vadd.f32 %v1216_v33, %v406_v61  ;;  %v1246_v6 = vsel %vm564_vm7, %v482_v49, %v596_v58  ;;  %vm563_vm9 = vcmp.gt.f32.partialorder %v477_v56, 0.0  ;;  %v492_v10 = vadd.f32 %v1074_v62, %v1216_v33 }
  0xf0   : > { %679 = vrot.lane.b32.xlu1 %v1234_v59, %s1109_s23  ;;  %v1253_v11 = vsel %vm547_vm8, %v397_v55, %v579_v0  ;;  %v582_v13 = vmul.f32 0.1, %v412_v4  ;;  %v487_v15 = vadd.f32 %v1216_v33, %v486_v63  ;;  %v1256_v16 = vsel %vm563_vm9, %v477_v56, %v595_v1 }
  0xf1   : > { %v1053_v3 = vpop.f32.mrb[6].mxu0  ;;  %v581_v14 = vmul.f32 0.1, %v407_v5  ;;  %vm550_vm10 = vcmp.gt.f32.partialorder %v412_v4, 0.0  ;;  %vm549_vm11 = vcmp.gt.f32.partialorder %v407_v5, 0.0  ;;  %vm566_vm12 = vcmp.gt.f32.partialorder %v492_v10, 0.0 }
  0xf2   : > { %v416_v7 = vpop.f32.mrb[7].mxu0  ;;  %v1077_v8 = vpop.f32.mrb[6].mxu1  ;;  %v598_v20 = vmul.f32 0.1, %v492_v10  ;;  %v422_v21 = vadd.f32 %v1053_v3, %v1216_v33  ;;  %v597_v23 = vmul.f32 0.1, %v487_v15  ;;  %v1264_v25 = vsel %vm550_vm10, %v412_v4, %v582_v13 }
  0xf3   : > { %705 = vrot.lane.b32.xlu0 %v1242_v2, %s1109_s23  ;;  %v496_v9 = vpop.f32.mrb[7].mxu1  ;;  %v417_v24 = vadd.f32 %v1216_v33, %v416_v7  ;;  %v1266_v26 = vsel %vm549_vm11, %v407_v5, %v581_v14  ;;  %vm565_vm13 = vcmp.gt.f32.partialorder %v487_v15, 0.0  ;;  %v502_v31 = vadd.f32 %v1077_v8, %v1216_v33 }
  0xf4   : > { %711 = vrot.lane.b32.xlu1 %v1246_v6, %s1109_s23  ;;  %v584_v30 = vmul.f32 0.1, %v422_v21  ;;  %v497_v35 = vadd.f32 %v1216_v33, %v496_v9  ;;  %v1274_v36 = vsel %vm566_vm12, %v492_v10, %v598_v20  ;;  %v1276_v37 = vsel %vm565_vm13, %v487_v15, %v597_v23 }
  0xf5   : > { %v1056_v12 = vpop.f32.mrb[8].mxu0  ;;  %v583_v34 = vmul.f32 0.1, %v417_v24  ;;  %vm552_vm14 = vcmp.gt.f32.partialorder %v422_v21, 0.0  ;;  %vm551_vm15 = vcmp.gt.f32.partialorder %v417_v24, 0.0  ;;  %vm568_vm0 = vcmp.gt.f32.partialorder %v502_v31, 0.0 }
  0xf6   : > { %v426_v17 = vpop.f32.mrb[9].mxu0  ;;  %v1080_v18 = vpop.f32.mrb[8].mxu1  ;;  %v600_v41 = vmul.f32 0.1, %v502_v31  ;;  %v432_v42 = vadd.f32 %v1056_v12, %v1216_v33  ;;  %v599_v44 = vmul.f32 0.1, %v497_v35  ;;  %v1286_v46 = vsel %vm552_vm14, %v422_v21, %v584_v30 }
  0xf7   : > { %709 = vrot.lane.b32.xlu0 %v1256_v16, %s1109_s23  ;;  %v506_v19 = vpop.f32.mrb[9].mxu1  ;;  %v427_v45 = vadd.f32 %v1216_v33, %v426_v17  ;;  %v1288_v47 = vsel %vm551_vm15, %v417_v24, %v583_v34  ;;  %vm567_vm1 = vcmp.gt.f32.partialorder %v497_v35, 0.0  ;;  %v512_v54 = vadd.f32 %v1080_v18, %v1216_v33 }
  0xf8   : > { %677 = vrot.lane.b32.xlu1 %v1253_v11, %s1109_s23  ;;  %v586_v53 = vmul.f32 0.1, %v432_v42  ;;  %v507_v56 = vadd.f32 %v1216_v33, %v506_v19  ;;  %v1300_v57 = vsel %vm568_vm0, %v502_v31, %v600_v41  ;;  %v1302_v58 = vsel %vm567_vm1, %v497_v35, %v599_v44 }
  0xf9   : > { %v1059_v22 = vpop.f32.mrb[10].mxu0  ;;  %v585_v55 = vmul.f32 0.1, %v427_v45  ;;  %vm554_vm2 = vcmp.gt.f32.partialorder %v432_v42, 0.0  ;;  %vm553_vm3 = vcmp.gt.f32.partialorder %v427_v45, 0.0  ;;  %vm570_vm4 = vcmp.gt.f32.partialorder %v512_v54, 0.0 }
  0xfa   : > { %v436_v27 = vpop.f32.mrb[11].mxu0  ;;  %v1083_v28 = vpop.f32.mrb[10].mxu1  ;;  %v602_v61 = vmul.f32 0.1, %v512_v54  ;;  %v442_v62 = vadd.f32 %v1059_v22, %v1216_v33  ;;  %v601_v63 = vmul.f32 0.1, %v507_v56  ;;  %v1310_v1 = vsel %vm554_vm2, %v432_v42, %v586_v53 }
  0xfb   : > { %681 = vrot.lane.b32.xlu0 %v1266_v26, %s1109_s23  ;;  %v516_v29 = vpop.f32.mrb[11].mxu1  ;;  %v437_v0 = vadd.f32 %v1216_v33, %v436_v27  ;;  %v1312_v3 = vsel %vm553_vm3, %v427_v45, %v585_v55  ;;  %vm569_vm5 = vcmp.gt.f32.partialorder %v507_v56, 0.0  ;;  %v522_v5 = vadd.f32 %v1083_v28, %v1216_v33 }
  0xfc   : > { %683 = vrot.lane.b32.xlu1 %v1264_v25, %s1109_s23  ;;  %v588_v4 = vmul.f32 0.1, %v442_v62  ;;  %v517_v8 = vadd.f32 %v1216_v33, %v516_v29  ;;  %v1320_v9 = vsel %vm570_vm4, %v512_v54, %v602_v61  ;;  %v1322_v10 = vsel %vm569_vm5, %v507_v56, %v601_v63 }
  0xfd   : > { %v1062_v32 = vpop.f32.mrb[12].mxu0  ;;  %v587_v7 = vmul.f32 0.1, %v437_v0  ;;  %vm556_vm6 = vcmp.gt.f32.partialorder %v442_v62, 0.0  ;;  %vm555_vm7 = vcmp.gt.f32.partialorder %v437_v0, 0.0  ;;  %vm572_vm8 = vcmp.gt.f32.partialorder %v522_v5, 0.0 }
  0xfe   : > { %v446_v38 = vpop.f32.mrb[13].mxu0  ;;  %v1086_v39 = vpop.f32.mrb[12].mxu1  ;;  %v604_v12 = vmul.f32 0.1, %v522_v5  ;;  %v452_v13 = vadd.f32 %v1062_v32, %v1216_v33  ;;  %v603_v14 = vmul.f32 0.1, %v517_v8  ;;  %v1330_v17 = vsel %vm556_vm6, %v442_v62, %v588_v4 }
  0xff   : > { %713 = vrot.lane.b32.xlu0 %v1276_v37, %s1109_s23  ;;  %v526_v40 = vpop.f32.mrb[13].mxu1  ;;  %v447_v15 = vadd.f32 %v1216_v33, %v446_v38  ;;  %v1332_v18 = vsel %vm555_vm7, %v437_v0, %v587_v7  ;;  %vm571_vm9 = vcmp.gt.f32.partialorder %v517_v8, 0.0  ;;  %v532_v20 = vadd.f32 %v1086_v39, %v1216_v33 }
 0x100   : > { %715 = vrot.lane.b32.xlu1 %v1274_v36, %s1109_s23  ;;  %v590_v19 = vmul.f32 0.1, %v452_v13  ;;  %v527_v22 = vadd.f32 %v1216_v33, %v526_v40  ;;  %v1340_v23 = vsel %vm572_vm8, %v522_v5, %v604_v12  ;;  %v1342_v24 = vsel %vm571_vm9, %v517_v8, %v603_v14 }
 0x101   : > { %v1283_v43 = vpop.f32.mrb[14].mxu0  ;;  %v589_v21 = vmul.f32 0.1, %v447_v15  ;;  %vm558_vm10 = vcmp.gt.f32.partialorder %v452_v13, 0.0  ;;  %vm557_vm11 = vcmp.gt.f32.partialorder %v447_v15, 0.0  ;;  %vm574_vm12 = vcmp.gt.f32.partialorder %v532_v20, 0.0 }
 0x102   : > { %v456_v48 = vpop.f32.mrb[15].mxu0  ;;  %v1290_v49 = vpop.f32.mrb[14].mxu1  ;;  %v606_v27 = vmul.f32 0.1, %v532_v20  ;;  %v462_v28 = vadd.f32 %v1283_v43, %v1216_v33  ;;  %v605_v29 = vmul.f32 0.1, %v527_v22  ;;  %v1351_v31 = vsel %vm558_vm10, %v452_v13, %v590_v19 }
 0x103   : > { %685 = vrot.lane.b32.xlu0 %v1288_v47, %s1109_s23  ;;  %v1296_v51 = vpop.f32.mrb[15].mxu1  ;;  %v457_v30 = vadd.f32 %v1216_v33, %v456_v48  ;;  %v1353_v32 = vsel %vm557_vm11, %v447_v15, %v589_v21  ;;  %vm573_vm13 = vcmp.gt.f32.partialorder %v527_v22, 0.0  ;;  %v542_v35 = vadd.f32 %v1290_v49, %v1216_v33 }
 0x104   : > { %687 = vrot.lane.b32.xlu1 %v1286_v46, %s1109_s23  ;;  %v592_v34 = vmul.f32 0.1, %v462_v28  ;;  %v537_v39 = vadd.f32 %v1216_v33, %v1296_v51  ;;  %v1363_v40 = vsel %vm574_vm12, %v532_v20, %v606_v27  ;;  %v1365_v41 = vsel %vm573_vm13, %v527_v22, %v605_v29 }
 0x105   : > { %v591_v38 = vmul.f32 0.1, %v457_v30  ;;  %vm560_vm14 = vcmp.gt.f32.partialorder %v462_v28, 0.0  ;;  %vm559_vm15 = vcmp.gt.f32.partialorder %v457_v30, 0.0  ;;  %v608_v42 = vmul.f32 0.1, %v542_v35 }
 0x106   : > { %v607_v43 = vmul.f32 0.1, %v537_v39  ;;  %v1371_v44 = vsel %vm560_vm14, %v462_v28, %v592_v34  ;;  %vm576_vm0 = vcmp.gt.f32.partialorder %v542_v35, 0.0  ;;  %vm575_vm1 = vcmp.gt.f32.partialorder %v537_v39, 0.0 }
 0x107   : > { %717 = vrot.lane.b32.xlu0 %v1302_v58, %s1109_s23  ;;  %v1373_v45 = vsel %vm559_vm15, %v457_v30, %v591_v38  ;;  %v1379_v33 = vsel %vm576_vm0, %v542_v35, %v608_v42  ;;  %vm769_vm2 = vcmask 64512   ;;  %vm802_vm3 = vcmask 130048  }
 0x108   : > { %719 = vrot.lane.b32.xlu1 %v1300_v57, %s1109_s23  ;;  %v1381_v48 = vsel %vm575_vm1, %v537_v39, %v607_v43 }
 0x10b   : > { %689 = vrot.lane.b32.xlu0 %v1312_v3, %s1109_s23 }
 0x10c   : > { %691 = vrot.lane.b32.xlu1 %v1310_v1, %s1109_s23 }
 0x10f   : > { %721 = vrot.lane.b32.xlu0 %v1322_v10, %s1109_s23 }
 0x110   : > { %723 = vrot.lane.b32.xlu1 %v1320_v9, %s1109_s23 }
 0x113   : > { %693 = vrot.lane.b32.xlu0 %v1332_v18, %s1109_s23 }
 0x114   : > { %695 = vrot.lane.b32.xlu1 %v1330_v17, %s1109_s23 }
 0x117   : > { %725 = vrot.lane.b32.xlu0 %v1342_v24, %s1109_s23 }
 0x118   : > { %727 = vrot.lane.b32.xlu1 %v1340_v23, %s1109_s23 }
 0x11b   : > { %697 = vrot.lane.b32.xlu0 %v1353_v32, %s1109_s23 }
 0x11c   : > { %699 = vrot.lane.b32.xlu1 %v1351_v31, %s1109_s23 }
 0x11f   : > { %729 = vrot.lane.b32.xlu0 %v1365_v41, %s1109_s23 }
 0x120   : > { %731 = vrot.lane.b32.xlu1 %v1363_v40, %s1109_s23 }
 0x123   : > { %701 = vrot.lane.b32.xlu0 %v1373_v45, %s1109_s23 }
 0x124   : > { %703 = vrot.lane.b32.xlu1 %v1371_v44, %s1109_s23 }
 0x127   : > { %733 = vrot.lane.b32.xlu0 %v1381_v48, %s1109_s23 }
 0x128   : > { %735 = vrot.lane.b32.xlu1 %v1379_v33, %s1109_s23 }
 0x15d   : > { %v676_v51 = vpop.permute.xlu0 %675 }
 0x15e   : > { %v708_v49 = vpop.permute.xlu1 %707  ;;  %v771_v54 = vsel %vm769_vm2, %v1226_v52, %v676_v51 }
 0x15f   : > { %v787_v53 = vsel %vm769_vm2, %v1224_v50, %v708_v49  ;;  %804 = vst.msk [vmem:[%s1391_s27 + $0x8] sm:$0xff] %vm802_vm3, %v771_v54  ;;  %972 = vst.msk [vmem:[%s1391_s27 + $0x18] sm:$0xff] %vm802_vm3, %v771_v54 }
 0x160   : > { %820 = vst.msk [vmem:[%s1391_s27 + $0x108] sm:$0xff] %vm802_vm3, %v787_v53  ;;  %988 = vst.msk [vmem:[%s1391_s27 + $0x118] sm:$0xff] %vm802_vm3, %v787_v53 }
 0x161   : > { %v674_v56 = vpop.permute.xlu0 %673 }
 0x162   : > { %v680_v55 = vpop.permute.xlu1 %679  ;;  %v770_v52 = vsel %vm769_vm2, %v1236_v60, %v674_v56 }
 0x163   : > { %v773_v50 = vsel %vm769_vm2, %v1234_v59, %v680_v55  ;;  %803 = vst.msk [vmem:[%s1391_s27] sm:$0xff] %vm802_vm3, %v770_v52  ;;  %971 = vst.msk [vmem:[%s1391_s27 + $0x10] sm:$0xff] %vm802_vm3, %v770_v52 }
 0x164   : > { %806 = vst.msk [vmem:[%s1391_s27 + $0x28] sm:$0xff] %vm802_vm3, %v773_v50  ;;  %974 = vst.msk [vmem:[%s1391_s27 + $0x38] sm:$0xff] %vm802_vm3, %v773_v50 }
 0x165   : > { %v706_v62 = vpop.permute.xlu0 %705 }
 0x166   : > { %v712_v61 = vpop.permute.xlu1 %711  ;;  %v786_v60 = vsel %vm769_vm2, %v1242_v2, %v706_v62 }
 0x167   : > { %v789_v59 = vsel %vm769_vm2, %v1246_v6, %v712_v61  ;;  %819 = vst.msk [vmem:[%s1391_s27 + $0x100] sm:$0xff] %vm802_vm3, %v786_v60  ;;  %987 = vst.msk [vmem:[%s1391_s27 + $0x110] sm:$0xff] %vm802_vm3, %v786_v60 }
 0x168   : > { %822 = vst.msk [vmem:[%s1391_s27 + $0x128] sm:$0xff] %vm802_vm3, %v789_v59  ;;  %990 = vst.msk [vmem:[%s1391_s27 + $0x138] sm:$0xff] %vm802_vm3, %v789_v59 }
 0x169   : > { %v710_v0 = vpop.permute.xlu0 %709 }
 0x16a   : > { %v678_v63 = vpop.permute.xlu1 %677  ;;  %v788_v2 = vsel %vm769_vm2, %v1256_v16, %v710_v0 }
 0x16b   : > { %v772_v6 = vsel %vm769_vm2, %v1253_v11, %v678_v63  ;;  %821 = vst.msk [vmem:[%s1391_s27 + $0x120] sm:$0xff] %vm802_vm3, %v788_v2  ;;  %989 = vst.msk [vmem:[%s1391_s27 + $0x130] sm:$0xff] %vm802_vm3, %v788_v2 }
 0x16c   : > { %805 = vst.msk [vmem:[%s1391_s27 + $0x20] sm:$0xff] %vm802_vm3, %v772_v6  ;;  %973 = vst.msk [vmem:[%s1391_s27 + $0x30] sm:$0xff] %vm802_vm3, %v772_v6 }
 0x16d   : > { %v682_v5 = vpop.permute.xlu0 %681 }
 0x16e   : > { %v684_v4 = vpop.permute.xlu1 %683  ;;  %v774_v16 = vsel %vm769_vm2, %v1266_v26, %v682_v5 }
 0x16f   : > { %v775_v11 = vsel %vm769_vm2, %v1264_v25, %v684_v4  ;;  %807 = vst.msk [vmem:[%s1391_s27 + $0x40] sm:$0xff] %vm802_vm3, %v774_v16  ;;  %975 = vst.msk [vmem:[%s1391_s27 + $0x50] sm:$0xff] %vm802_vm3, %v774_v16 }
 0x170   : > { %808 = vst.msk [vmem:[%s1391_s27 + $0x48] sm:$0xff] %vm802_vm3, %v775_v11  ;;  %976 = vst.msk [vmem:[%s1391_s27 + $0x58] sm:$0xff] %vm802_vm3, %v775_v11 }
 0x171   : > { %v714_v8 = vpop.permute.xlu0 %713 }
 0x172   : > { %v716_v7 = vpop.permute.xlu1 %715  ;;  %v790_v26 = vsel %vm769_vm2, %v1276_v37, %v714_v8 }
 0x173   : > { %v791_v25 = vsel %vm769_vm2, %v1274_v36, %v716_v7  ;;  %823 = vst.msk [vmem:[%s1391_s27 + $0x140] sm:$0xff] %vm802_vm3, %v790_v26  ;;  %991 = vst.msk [vmem:[%s1391_s27 + $0x150] sm:$0xff] %vm802_vm3, %v790_v26 }
 0x174   : > { %824 = vst.msk [vmem:[%s1391_s27 + $0x148] sm:$0xff] %vm802_vm3, %v791_v25  ;;  %992 = vst.msk [vmem:[%s1391_s27 + $0x158] sm:$0xff] %vm802_vm3, %v791_v25 }
 0x175   : > { %v686_v13 = vpop.permute.xlu0 %685 }
 0x176   : > { %v688_v12 = vpop.permute.xlu1 %687  ;;  %v776_v37 = vsel %vm769_vm2, %v1288_v47, %v686_v13 }
 0x177   : > { %v777_v36 = vsel %vm769_vm2, %v1286_v46, %v688_v12  ;;  %809 = vst.msk [vmem:[%s1391_s27 + $0x60] sm:$0xff] %vm802_vm3, %v776_v37  ;;  %977 = vst.msk [vmem:[%s1391_s27 + $0x70] sm:$0xff] %vm802_vm3, %v776_v37 }
 0x178   : > { %810 = vst.msk [vmem:[%s1391_s27 + $0x68] sm:$0xff] %vm802_vm3, %v777_v36  ;;  %978 = vst.msk [vmem:[%s1391_s27 + $0x78] sm:$0xff] %vm802_vm3, %v777_v36 }
 0x179   : > { %v718_v15 = vpop.permute.xlu0 %717 }
 0x17a   : > { %v720_v14 = vpop.permute.xlu1 %719  ;;  %v792_v47 = vsel %vm769_vm2, %v1302_v58, %v718_v15 }
 0x17b   : > { %v793_v46 = vsel %vm769_vm2, %v1300_v57, %v720_v14  ;;  %825 = vst.msk [vmem:[%s1391_s27 + $0x160] sm:$0xff] %vm802_vm3, %v792_v47  ;;  %993 = vst.msk [vmem:[%s1391_s27 + $0x170] sm:$0xff] %vm802_vm3, %v792_v47 }
 0x17c   : > { %826 = vst.msk [vmem:[%s1391_s27 + $0x168] sm:$0xff] %vm802_vm3, %v793_v46  ;;  %994 = vst.msk [vmem:[%s1391_s27 + $0x178] sm:$0xff] %vm802_vm3, %v793_v46 }
 0x17d   : > { %v690_v20 = vpop.permute.xlu0 %689 }
 0x17e   : > { %v692_v19 = vpop.permute.xlu1 %691  ;;  %v778_v58 = vsel %vm769_vm2, %v1312_v3, %v690_v20 }
 0x17f   : > { %v779_v57 = vsel %vm769_vm2, %v1310_v1, %v692_v19  ;;  %811 = vst.msk [vmem:[%s1391_s27 + $0x80] sm:$0xff] %vm802_vm3, %v778_v58  ;;  %979 = vst.msk [vmem:[%s1391_s27 + $0x90] sm:$0xff] %vm802_vm3, %v778_v58 }
 0x180   : > { %812 = vst.msk [vmem:[%s1391_s27 + $0x88] sm:$0xff] %vm802_vm3, %v779_v57  ;;  %980 = vst.msk [vmem:[%s1391_s27 + $0x98] sm:$0xff] %vm802_vm3, %v779_v57 }
 0x181   : > { %v722_v22 = vpop.permute.xlu0 %721 }
 0x182   : > { %v724_v21 = vpop.permute.xlu1 %723  ;;  %v794_v3 = vsel %vm769_vm2, %v1322_v10, %v722_v22 }
 0x183   : > { %v795_v1 = vsel %vm769_vm2, %v1320_v9, %v724_v21  ;;  %827 = vst.msk [vmem:[%s1391_s27 + $0x180] sm:$0xff] %vm802_vm3, %v794_v3  ;;  %995 = vst.msk [vmem:[%s1391_s27 + $0x190] sm:$0xff] %vm802_vm3, %v794_v3 }
 0x184   : > { %828 = vst.msk [vmem:[%s1391_s27 + $0x188] sm:$0xff] %vm802_vm3, %v795_v1  ;;  %996 = vst.msk [vmem:[%s1391_s27 + $0x198] sm:$0xff] %vm802_vm3, %v795_v1 }
 0x185   : > { %v694_v28 = vpop.permute.xlu0 %693 }
 0x186   : > { %v696_v27 = vpop.permute.xlu1 %695  ;;  %v780_v10 = vsel %vm769_vm2, %v1332_v18, %v694_v28 }
 0x187   : > { %v781_v9 = vsel %vm769_vm2, %v1330_v17, %v696_v27  ;;  %813 = vst.msk [vmem:[%s1391_s27 + $0xa0] sm:$0xff] %vm802_vm3, %v780_v10  ;;  %981 = vst.msk [vmem:[%s1391_s27 + $0xb0] sm:$0xff] %vm802_vm3, %v780_v10 }
 0x188   : > { %814 = vst.msk [vmem:[%s1391_s27 + $0xa8] sm:$0xff] %vm802_vm3, %v781_v9  ;;  %982 = vst.msk [vmem:[%s1391_s27 + $0xb8] sm:$0xff] %vm802_vm3, %v781_v9 }
 0x189   : > { %v726_v30 = vpop.permute.xlu0 %725 }
 0x18a   : > { %v728_v29 = vpop.permute.xlu1 %727  ;;  %v796_v18 = vsel %vm769_vm2, %v1342_v24, %v726_v30 }
 0x18b   : > { %v797_v17 = vsel %vm769_vm2, %v1340_v23, %v728_v29  ;;  %829 = vst.msk [vmem:[%s1391_s27 + $0x1a0] sm:$0xff] %vm802_vm3, %v796_v18  ;;  %997 = vst.msk [vmem:[%s1391_s27 + $0x1b0] sm:$0xff] %vm802_vm3, %v796_v18 }
 0x18c   : > { %830 = vst.msk [vmem:[%s1391_s27 + $0x1a8] sm:$0xff] %vm802_vm3, %v797_v17  ;;  %998 = vst.msk [vmem:[%s1391_s27 + $0x1b8] sm:$0xff] %vm802_vm3, %v797_v17 }
 0x18d   : > { %v698_v35 = vpop.permute.xlu0 %697 }
 0x18e   : > { %v700_v34 = vpop.permute.xlu1 %699  ;;  %v782_v24 = vsel %vm769_vm2, %v1353_v32, %v698_v35 }
 0x18f   : > { %v783_v23 = vsel %vm769_vm2, %v1351_v31, %v700_v34  ;;  %815 = vst.msk [vmem:[%s1391_s27 + $0xc0] sm:$0xff] %vm802_vm3, %v782_v24  ;;  %983 = vst.msk [vmem:[%s1391_s27 + $0xd0] sm:$0xff] %vm802_vm3, %v782_v24 }
 0x190   : > { %816 = vst.msk [vmem:[%s1391_s27 + $0xc8] sm:$0xff] %vm802_vm3, %v783_v23  ;;  %984 = vst.msk [vmem:[%s1391_s27 + $0xd8] sm:$0xff] %vm802_vm3, %v783_v23 }
 0x191   : > { %v730_v39 = vpop.permute.xlu0 %729 }
 0x192   : > { %v732_v38 = vpop.permute.xlu1 %731  ;;  %v798_v32 = vsel %vm769_vm2, %v1365_v41, %v730_v39 }
 0x193   : > { %v799_v31 = vsel %vm769_vm2, %v1363_v40, %v732_v38  ;;  %831 = vst.msk [vmem:[%s1391_s27 + $0x1c0] sm:$0xff] %vm802_vm3, %v798_v32  ;;  %999 = vst.msk [vmem:[%s1391_s27 + $0x1d0] sm:$0xff] %vm802_vm3, %v798_v32 }
 0x194   : > { %832 = vst.msk [vmem:[%s1391_s27 + $0x1c8] sm:$0xff] %vm802_vm3, %v799_v31  ;;  %1000 = vst.msk [vmem:[%s1391_s27 + $0x1d8] sm:$0xff] %vm802_vm3, %v799_v31 }
 0x195   : > { %v702_v43 = vpop.permute.xlu0 %701 }
 0x196   : > { %v704_v42 = vpop.permute.xlu1 %703  ;;  %v784_v41 = vsel %vm769_vm2, %v1373_v45, %v702_v43 }
 0x197   : > { %v785_v40 = vsel %vm769_vm2, %v1371_v44, %v704_v42  ;;  %817 = vst.msk [vmem:[%s1391_s27 + $0xe0] sm:$0xff] %vm802_vm3, %v784_v41  ;;  %985 = vst.msk [vmem:[%s1391_s27 + $0xf0] sm:$0xff] %vm802_vm3, %v784_v41 }
 0x198   : > { %818 = vst.msk [vmem:[%s1391_s27 + $0xe8] sm:$0xff] %vm802_vm3, %v785_v40  ;;  %986 = vst.msk [vmem:[%s1391_s27 + $0xf8] sm:$0xff] %vm802_vm3, %v785_v40 }
 0x199   : > { %v734_v51 = vpop.permute.xlu0 %733 }
 0x19a   : > { %v736_v49 = vpop.permute.xlu1 %735  ;;  %v800_v54 = vsel %vm769_vm2, %v1381_v48, %v734_v51 }
 0x19b   : > { %v801_v53 = vsel %vm769_vm2, %v1379_v33, %v736_v49  ;;  %833 = vst.msk [vmem:[%s1391_s27 + $0x1e0] sm:$0xff] %vm802_vm3, %v800_v54  ;;  %1001 = vst.msk [vmem:[%s1391_s27 + $0x1f0] sm:$0xff] %vm802_vm3, %v800_v54 }
 0x19c   : > { %834 = vst.msk [vmem:[%s1391_s27 + $0x1e8] sm:$0xff] %vm802_vm3, %v801_v53  ;;  %1002 = vst.msk [vmem:[%s1391_s27 + $0x1f8] sm:$0xff] %vm802_vm3, %v801_v53 }
 0x19d PF: > { %s13_s12 = sadd.s32 1, %s1107_s12  }
 0x19e   : > { %p10_p4 = scmp.ge.s32.totalorder %s13_s12, 4  }
 0x1a0   :  { %12 = sbr.rel (!%p10_p4) target bundleno = 1 (0x1), region = 63 }

</bundles_post_ra>
